<compile_context>
chip_gen: v7x
topology: tpu7x:2x2x1
jax: 0.10.0
libtpu: 0.0.40
codegen_flags: <defaults>
</compile_context>

<pallas_src>
import functools
import math

import jax
import jax.numpy as jnp
from jax.experimental import pallas as pl
from jax.experimental.pallas import tpu as pltpu


# ----------------------------------------------------------------------------
# helpers
# ----------------------------------------------------------------------------
def _row_tile(M, target=256):
    """Largest multiple-of-8 divisor of M that is <= target; prefers a tile
    that yields >= 2 grid steps so v7x's two TensorCores both get work."""
    candidates = (1024, 512, 256, 128, 64, 32, 16, 8)
    best = M
    for t in candidates:
        if t <= target and M % t == 0:
            best = t
            break
    if best == M and M > 8:
        for t in candidates:
            if t < M and M % t == 0:
                best = t
                break
    return best


def _ff_tile(FF, target=512):
    """FF-contraction tile: multiple of 128 dividing FF, else full FF."""
    for t in (512, 256, 128):
        if t <= target and FF % t == 0:
            return t
    return FF


def _cparams(semantics):
    return pltpu.CompilerParams(
        dimension_semantics=semantics,
        vmem_limit_bytes=48 * 1024 * 1024,   # <= physical on v5e/v6e/v7x
    )


def _ce(flops, trans, bytes_):
    return pl.CostEstimate(flops=int(flops), transcendentals=int(trans),
                           bytes_accessed=int(bytes_))


def _layer_norm(z, g_ref, b_ref, eps):
    """z: (M, E) f32 -> (M, E) f32."""
    mu = jnp.mean(z, axis=-1, keepdims=True)
    d = z - mu
    var = jnp.mean(d * d, axis=-1, keepdims=True)
    return (d * jax.lax.rsqrt(var + eps) * g_ref[...].astype(jnp.float32)
            + b_ref[...].astype(jnp.float32))


def _mha_attn_proj(q, k, v, w_out_ref, nhead):
    """Multi-head attention + fused output projection.

    q: (L, E) f32 (softmax scale already folded into the Q weights),
    k, v: (S, E) f32, w_out_ref: (E, E) bf16 ref holding W_out^T.
    Returns concat_h(softmax(q_h k_h^T) v_h) @ W_out^T as (L, E) f32,
    accumulated per head: no lane concat, no explicit k^T materialization.
    """
    L, E = q.shape
    Dh = E // nhead
    out = jnp.zeros((L, E), jnp.float32)
    for h in range(nhead):
        sl = slice(h * Dh, (h + 1) * Dh)
        qh = q[:, sl].astype(jnp.bfloat16)
        kh = k[:, sl].astype(jnp.bfloat16)
        vh = v[:, sl].astype(jnp.bfloat16)
        # scores: contract on the Dh axis of both operands
        s = jax.lax.dot_general(qh, kh, (((1,), (1,)), ((), ())),
                                preferred_element_type=jnp.float32)   # (L, S)
        m = jnp.max(s, axis=-1, keepdims=True)
        p = jnp.exp(s - m)
        p = p * pl.reciprocal(jnp.sum(p, axis=-1, keepdims=True), approx=True)
        oh = jnp.dot(p.astype(jnp.bfloat16), vh,
                     preferred_element_type=jnp.float32)              # (L, Dh)
        # fused out-projection: out += o_h @ W_out^T[h*Dh:(h+1)*Dh, :]
        out = out + jnp.dot(oh.astype(jnp.bfloat16), w_out_ref[sl, :],
                            preferred_element_type=jnp.float32)
    return out


# ----------------------------------------------------------------------------
# Kernel A: fused self-attention block  norm1(x + OutProj(MHA(QKV(x))))
# ----------------------------------------------------------------------------
def _sa_block_kernel(x_ref, w_in_ref, b_in_ref, w_out_ref, b_out_ref,
                     g_ref, be_ref, o_ref, *, nhead, eps):
    x = x_ref[0]                                               # (L, E) bf16
    E = x.shape[1]
    qkv = jnp.dot(x, w_in_ref[...], preferred_element_type=jnp.float32)
    qkv = qkv + b_in_ref[...].astype(jnp.float32)              # (L, 3E) f32
    attn = _mha_attn_proj(qkv[:, :E], qkv[:, E:2 * E], qkv[:, 2 * E:],
                          w_out_ref, nhead)                    # (L, E) f32
    z = attn + b_out_ref[...].astype(jnp.float32) + x.astype(jnp.float32)
    o_ref[0] = _layer_norm(z, g_ref, be_ref, eps).astype(o_ref.dtype)


def self_attn_block(x, p, gamma, beta, nhead, eps):
    """x: (B, L, E) bf16 -> (B, L, E) bf16."""
    B, L, E = x.shape
    flops = B * (2 * L * E * 3 * E + 4 * L * L * E + 2 * L * E * E)
    bytes_ = 2 * (2 * B * L * E) + 2 * (E * 3 * E + E * E) + 4 * (8 * E)
    return pl.pallas_call(
        functools.partial(_sa_block_kernel, nhead=nhead, eps=eps),
        out_shape=jax.ShapeDtypeStruct((B, L, E), x.dtype),
        grid=(B,),
        in_specs=[
            pl.BlockSpec((1, L, E), lambda b: (b, 0, 0)),
            pl.BlockSpec((E, 3 * E), lambda b: (0, 0)),
            pl.BlockSpec((1, 3 * E), lambda b: (0, 0)),
            pl.BlockSpec((E, E), lambda b: (0, 0)),
            pl.BlockSpec((1, E), lambda b: (0, 0)),
            pl.BlockSpec((1, E), lambda b: (0, 0)),
            pl.BlockSpec((1, E), lambda b: (0, 0)),
        ],
        out_specs=pl.BlockSpec((1, L, E), lambda b: (b, 0, 0)),
        compiler_params=_cparams(("parallel",)),
        cost_estimate=_ce(flops, B * nhead * L * L, bytes_),
    )(x, p["w_in_t"], p["b_in"], p["w_out_t"], p["b_out"], gamma, beta)


# ----------------------------------------------------------------------------
# Kernel B: fused cross-attention block norm2(sat + OutProj(MHA(Q(sat),KV(mem))))
# ----------------------------------------------------------------------------
def _ca_block_kernel(sat_ref, mem_ref, wq_ref, bq_ref, wkv_ref, bkv_ref,
                     wout_ref, bout_ref, g_ref, be_ref, o_ref, *, nhead, eps):
    sat = sat_ref[0]                                           # (L, E) bf16
    mem = mem_ref[0]                                           # (S, E) bf16
    E = sat.shape[1]
    q = (jnp.dot(sat, wq_ref[...], preferred_element_type=jnp.float32)
         + bq_ref[...].astype(jnp.float32))                    # (L, E) f32
    kv = (jnp.dot(mem, wkv_ref[...], preferred_element_type=jnp.float32)
          + bkv_ref[...].astype(jnp.float32))                  # (S, 2E) f32
    attn = _mha_attn_proj(q, kv[:, :E], kv[:, E:], wout_ref, nhead)
    z = attn + bout_ref[...].astype(jnp.float32) + sat.astype(jnp.float32)
    o_ref[0] = _layer_norm(z, g_ref, be_ref, eps).astype(o_ref.dtype)


def cross_attn_block(sat, mem, p, gamma, beta, nhead, eps):
    """sat: (B, L, E) bf16, mem: (B, S, E) bf16 -> (B, L, E) bf16."""
    B, L, E = sat.shape
    S = mem.shape[1]
    flops = B * (2 * L * E * E + 2 * S * E * 2 * E + 4 * L * S * E
                 + 2 * L * E * E)
    bytes_ = 2 * (2 * B * L * E + B * S * E) + 2 * (4 * E * E) + 4 * (8 * E)
    return pl.pallas_call(
        functools.partial(_ca_block_kernel, nhead=nhead, eps=eps),
        out_shape=jax.ShapeDtypeStruct((B, L, E), sat.dtype),
        grid=(B,),
        in_specs=[
            pl.BlockSpec((1, L, E), lambda b: (b, 0, 0)),
            pl.BlockSpec((1, S, E), lambda b: (b, 0, 0)),
            pl.BlockSpec((E, E), lambda b: (0, 0)),
            pl.BlockSpec((1, E), lambda b: (0, 0)),
            pl.BlockSpec((E, 2 * E), lambda b: (0, 0)),
            pl.BlockSpec((1, 2 * E), lambda b: (0, 0)),
            pl.BlockSpec((E, E), lambda b: (0, 0)),
            pl.BlockSpec((1, E), lambda b: (0, 0)),
            pl.BlockSpec((1, E), lambda b: (0, 0)),
            pl.BlockSpec((1, E), lambda b: (0, 0)),
        ],
        out_specs=pl.BlockSpec((1, L, E), lambda b: (b, 0, 0)),
        compiler_params=_cparams(("parallel",)),
        cost_estimate=_ce(flops, B * nhead * L * S, bytes_),
    )(sat, mem, p["w_q_t"], p["b_q"], p["w_kv_t"], p["b_kv"],
      p["w_out_t"], p["b_out"], gamma, beta)


# ----------------------------------------------------------------------------
# Kernel C: fused FFN  norm3(x + linear2(relu(linear1(x)))), FF-tiled
# ----------------------------------------------------------------------------
def _ffn_ln_kernel(x_ref, w1_ref, b1_ref, w2_ref, b2_ref, g_ref, be_ref,
                   o_ref, acc_ref, *, eps):
    f = pl.program_id(1)

    @pl.when(f == 0)
    def _():
        acc_ref[...] = jnp.zeros_like(acc_ref)

    x = x_ref[...]                                             # (tm, E) bf16
    h = jnp.dot(x, w1_ref[...], preferred_element_type=jnp.float32)
    h = jnp.maximum(h + b1_ref[...].astype(jnp.float32), 0.0)  # (tm, tf) f32
    acc_ref[...] += jnp.dot(h.astype(jnp.bfloat16), w2_ref[...],
                            preferred_element_type=jnp.float32)

    @pl.when(f == pl.num_programs(1) - 1)
    def _():
        z = (acc_ref[...] + x.astype(jnp.float32)
             + b2_ref[...].astype(jnp.float32))
        o_ref[...] = _layer_norm(z, g_ref, be_ref, eps).astype(o_ref.dtype)


def ffn_ln(x, w1t, b1, w2t, b2, gamma, beta, eps):
    """x: (M, E) bf16, w1t: (E, FF) bf16, w2t: (FF, E) bf16 -> (M, E) f32."""
    M, E = x.shape
    FF = w1t.shape[1]
    tm = _row_tile(M, target=256)
    tf = _ff_tile(FF)
    flops = 4 * M * E * FF + 10 * M * E
    bytes_ = 2 * (M * E) + 4 * (M * E) + 2 * (2 * E * FF) + 4 * (FF + 4 * E)
    return pl.pallas_call(
        functools.partial(_ffn_ln_kernel, eps=eps),
        out_shape=jax.ShapeDtypeStruct((M, E), jnp.float32),
        grid=(M // tm, FF // tf),
        in_specs=[
            pl.BlockSpec((tm, E), lambda i, f: (i, 0)),
            pl.BlockSpec((E, tf), lambda i, f: (0, f)),
            pl.BlockSpec((1, tf), lambda i, f: (0, f)),
            pl.BlockSpec((tf, E), lambda i, f: (f, 0)),
            pl.BlockSpec((1, E), lambda i, f: (0, 0)),
            pl.BlockSpec((1, E), lambda i, f: (0, 0)),
            pl.BlockSpec((1, E), lambda i, f: (0, 0)),
        ],
        out_specs=pl.BlockSpec((tm, E), lambda i, f: (i, 0)),
        scratch_shapes=[pltpu.VMEM((tm, E), jnp.float32)],
        compiler_params=_cparams(("parallel", "arbitrary")),
        cost_estimate=_ce(flops, M, bytes_),
    )(x, w1t, b1, w2t, b2, gamma, beta)


# ----------------------------------------------------------------------------
# Mesh_TransformerDecoderLayer forward
# ----------------------------------------------------------------------------
def mesh_decoder_layer_forward(tgt, memory, params):
    """tgt: (L, B, E), memory: (S, B, E)  (PyTorch batch_first=False)."""
    eps = params["eps"]
    nhead = params["nhead"]

    # one transpose+cast per operand (batch-contiguous layout for attention)
    x = jnp.transpose(tgt, (1, 0, 2)).astype(jnp.bfloat16)       # (B, L, E)
    mem = jnp.transpose(memory, (1, 0, 2)).astype(jnp.bfloat16)  # (B, S, E)
    B, L, E = x.shape

    # self_att_tgt = norm1(tgt + SA(tgt))
    sat = self_attn_block(x, params["self_attn"],
                          params["norm1_g"], params["norm1_b"], nhead, eps)

    # x2 = norm2(self_att_tgt + CA(self_att_tgt, memory))   (multihead_attn2)
    x2 = cross_attn_block(sat, mem, params["mha2"],
                          params["norm2_g"], params["norm2_b"], nhead, eps)

    # x3 = norm3(x2 + linear2(relu(linear1(x2))))
    x3 = ffn_ln(x2.reshape(B * L, E), params["w1_t"], params["b1"],
                params["w2_t"], params["b2"],
                params["norm3_g"], params["norm3_b"], eps)        # f32

    return jnp.transpose(x3.reshape(B, L, E), (1, 0, 2))          # (L, B, E)


# ----------------------------------------------------------------------------
# Deterministic parameter construction
#   * weights pre-transposed once, stored bf16
#   * 1/sqrt(head_dim) softmax scale folded into the Q projection
# ----------------------------------------------------------------------------
def make_mha_params(key, d_model, nhead):
    E = d_model
    scale = 1.0 / math.sqrt(E // nhead)
    k1, k2 = jax.random.split(key)
    bound_in = math.sqrt(6.0 / (3 * E + E))                 # xavier_uniform
    w_in = jax.random.uniform(k1, (3 * E, E), jnp.float32, -bound_in, bound_in)
    b_in = jnp.zeros((3 * E,), jnp.float32)
    bound_out = math.sqrt(6.0 / (E + E))
    w_out = jax.random.uniform(k2, (E, E), jnp.float32, -bound_out, bound_out)
    b_out = jnp.zeros((E,), jnp.float32)
    w_in_s = w_in.at[:E].multiply(scale)                    # fold softmax scale
    b_in_s = b_in.at[:E].multiply(scale)
    return {
        "w_in_t":  jnp.asarray(w_in_s.T, jnp.bfloat16),     # (E, 3E) q-scaled
        "b_in":    b_in_s.reshape(1, 3 * E),
        "w_q_t":   jnp.asarray(w_in_s[:E].T, jnp.bfloat16), # (E, E)  q-scaled
        "b_q":     b_in_s[:E].reshape(1, E),
        "w_kv_t":  jnp.asarray(w_in[E:].T, jnp.bfloat16),   # (E, 2E)
        "b_kv":    b_in[E:].reshape(1, 2 * E),
        "w_out_t": jnp.asarray(w_out.T, jnp.bfloat16),      # (E, E)
        "b_out":   b_out.reshape(1, E),
    }


def make_params(key, d_model, nhead, dim_feedforward, eps=1e-5):
    E, FF = d_model, dim_feedforward
    ks = jax.random.split(key, 8)
    w1 = jax.random.normal(ks[2], (FF, E), jnp.float32) * (1.0 / math.sqrt(E))
    b1 = jax.random.normal(ks[3], (FF,), jnp.float32) * 0.01
    w2 = jax.random.normal(ks[4], (E, FF), jnp.float32) * (1.0 / math.sqrt(FF))
    b2 = jax.random.normal(ks[5], (E,), jnp.float32) * 0.01
    params = {
        "nhead": nhead,
        "eps": eps,
        "self_attn": make_mha_params(ks[0], E, nhead),
        "mha2": make_mha_params(ks[1], E, nhead),
        "w1_t": jnp.asarray(w1.T, jnp.bfloat16),            # (E, FF)
        "b1":   b1.reshape(1, FF),
        "w2_t": jnp.asarray(w2.T, jnp.bfloat16),             # (FF, E)
        "b2":   b2.reshape(1, E),
        "norm1_g": jnp.ones((1, E), jnp.float32),
        "norm1_b": jnp.zeros((1, E), jnp.float32),
        "norm2_g": jnp.ones((1, E), jnp.float32),
        "norm2_b": jnp.zeros((1, E), jnp.float32),
        "norm3_g": jnp.ones((1, E), jnp.float32),
        "norm3_b": jnp.zeros((1, E), jnp.float32),
    }
    # NOTE: fc_alpha1/2/3, self_attn2, multihead_attn, multihead_attn3 exist
    # in the module's __init__ but are unused in forward(), so they're omitted.
    return params


if __name__ == "__main__":
    d_model, nhead, dim_feedforward = 32, 4, 64
    L, S, B = 8, 16, 2

    root = jax.random.PRNGKey(0)
    k_t, k_m, k_p = jax.random.split(root, 3)

    tgt = jax.random.normal(k_t, (L, B, d_model), jnp.float32)
    memory = jax.random.normal(k_m, (S, B, d_model), jnp.float32)
    params = make_params(k_p, d_model, nhead, dim_feedforward)

    out = mesh_decoder_layer_forward(tgt, memory, params)
    jax.block_until_ready(out)
    assert out.shape == (L, B, d_model)
    assert bool(jnp.all(jnp.isfinite(out)))
    print("KERNEL_OK")
</pallas_src>

<mosaic_0001>
module attributes {stable_mosaic.version = 11 : i64} {
  func.func @_sa_block_kernel(%arg0: i32, %arg1: memref<1x8x32xbf16, #tpu.memory_space<vmem>>, %arg2: memref<32x96xbf16, #tpu.memory_space<vmem>>, %arg3: memref<1x96xf32, #tpu.memory_space<vmem>>, %arg4: memref<32x32xbf16, #tpu.memory_space<vmem>>, %arg5: memref<1x32xf32, #tpu.memory_space<vmem>>, %arg6: memref<1x32xf32, #tpu.memory_space<vmem>>, %arg7: memref<1x32xf32, #tpu.memory_space<vmem>>, %arg8: memref<1x8x32xbf16, #tpu.memory_space<vmem>>) attributes {dimension_semantics = [#tpu.dimension_semantics<parallel>], iteration_bounds = array<i64: 2>, scalar_prefetch = 0 : i64, scratch_operands = 0 : i64, tpu.core_type = #tpu.core_type<tc>, window_params = [{transform_indices = @transform_0, window_bounds = array<i64: 1, 8, 32>}, {pipeline_mode = #tpu.pipeline_mode<synchronous>, transform_indices = @transform_1, window_bounds = array<i64: 32, 96>}, {pipeline_mode = #tpu.pipeline_mode<synchronous>, transform_indices = @transform_2, window_bounds = array<i64: 1, 96>}, {pipeline_mode = #tpu.pipeline_mode<synchronous>, transform_indices = @transform_3, window_bounds = array<i64: 32, 32>}, {pipeline_mode = #tpu.pipeline_mode<synchronous>, transform_indices = @transform_4, window_bounds = array<i64: 1, 32>}, {pipeline_mode = #tpu.pipeline_mode<synchronous>, transform_indices = @transform_5, window_bounds = array<i64: 1, 32>}, {pipeline_mode = #tpu.pipeline_mode<synchronous>, transform_indices = @transform_6, window_bounds = array<i64: 1, 32>}, {transform_indices = @transform_7, window_bounds = array<i64: 1, 8, 32>}]} {
    %c0 = arith.constant 0 : index
    %c0_0 = arith.constant 0 : index
    %c0_1 = arith.constant 0 : index
    %0 = vector.load %arg1[%c0, %c0_0, %c0_1] : memref<1x8x32xbf16, #tpu.memory_space<vmem>>, vector<1x8x32xbf16>
    %1 = vector.shape_cast %0 : vector<1x8x32xbf16> to vector<8x32xbf16>
    %c0_2 = arith.constant 0 : index
    %c0_3 = arith.constant 0 : index
    %2 = vector.load %arg2[%c0_2, %c0_3] : memref<32x96xbf16, #tpu.memory_space<vmem>>, vector<32x96xbf16>
    %cst = arith.constant dense<0.000000e+00> : vector<8x96xf32>
    %3 = tpu.matmul %1, %2, %cst {dimension_numbers = #tpu.dot_dimension_numbers<[1], [0], [0], [1], [0, 0, 1, 1], [], []>} : vector<8x32xbf16>, vector<32x96xbf16>, vector<8x96xf32> -> vector<8x96xf32>
    %c0_4 = arith.constant 0 : index
    %c0_5 = arith.constant 0 : index
    %4 = vector.load %arg3[%c0_4, %c0_5] : memref<1x96xf32, #tpu.memory_space<vmem>>, vector<1x96xf32>
    %5 = vector.broadcast %4 : vector<1x96xf32> to vector<8x96xf32>
    %6 = arith.addf %3, %5 : vector<8x96xf32>
    %7 = vector.extract_strided_slice %6 {offsets = [0, 0], sizes = [8, 32], strides = [1, 1]} : vector<8x96xf32> to vector<8x32xf32>
    %8 = vector.extract_strided_slice %6 {offsets = [0, 32], sizes = [8, 32], strides = [1, 1]} : vector<8x96xf32> to vector<8x32xf32>
    %9 = vector.extract_strided_slice %6 {offsets = [0, 64], sizes = [8, 32], strides = [1, 1]} : vector<8x96xf32> to vector<8x32xf32>
    %cst_6 = arith.constant 0.000000e+00 : f32
    %10 = vector.broadcast %cst_6 : f32 to vector<8x32xf32>
    %11 = vector.extract_strided_slice %7 {offsets = [0, 0], sizes = [8, 8], strides = [1, 1]} : vector<8x32xf32> to vector<8x8xf32>
    %12 = arith.truncf %11 : vector<8x8xf32> to vector<8x8xbf16>
    %13 = vector.extract_strided_slice %8 {offsets = [0, 0], sizes = [8, 8], strides = [1, 1]} : vector<8x32xf32> to vector<8x8xf32>
    %14 = arith.truncf %13 : vector<8x8xf32> to vector<8x8xbf16>
    %15 = vector.extract_strided_slice %9 {offsets = [0, 0], sizes = [8, 8], strides = [1, 1]} : vector<8x32xf32> to vector<8x8xf32>
    %16 = arith.truncf %15 : vector<8x8xf32> to vector<8x8xbf16>
    %cst_7 = arith.constant dense<0.000000e+00> : vector<8x8xf32>
    %17 = tpu.matmul %12, %14, %cst_7 {dimension_numbers = #tpu.dot_dimension_numbers<[1], [1], [0], [0], [0, 0, 1, 0], [], []>} : vector<8x8xbf16>, vector<8x8xbf16>, vector<8x8xf32> -> vector<8x8xf32>
    %cst_8 = arith.constant dense<0xFF800000> : vector<8xf32>
    %18 = vector.multi_reduction <maximumf>, %17, %cst_8 [1] : vector<8x8xf32> to vector<8xf32>
    %19 = vector.shape_cast %18 : vector<8xf32> to vector<8x1xf32>
    %20 = vector.broadcast %19 : vector<8x1xf32> to vector<8x8xf32>
    %21 = arith.subf %17, %20 : vector<8x8xf32>
    %22 = math.exp %21 : vector<8x8xf32>
    %cst_9 = arith.constant dense<0.000000e+00> : vector<8xf32>
    %23 = vector.multi_reduction <add>, %22, %cst_9 [1] : vector<8x8xf32> to vector<8xf32>
    %24 = vector.shape_cast %23 : vector<8xf32> to vector<8x1xf32>
    %25 = tpu.reciprocal %24 {approx = true} : vector<8x1xf32> -> vector<8x1xf32>
    %26 = vector.broadcast %25 : vector<8x1xf32> to vector<8x8xf32>
    %27 = arith.mulf %22, %26 : vector<8x8xf32>
    %28 = arith.truncf %27 : vector<8x8xf32> to vector<8x8xbf16>
    %cst_10 = arith.constant dense<0.000000e+00> : vector<8x8xf32>
    %29 = tpu.matmul %28, %16, %cst_10 {dimension_numbers = #tpu.dot_dimension_numbers<[1], [0], [0], [1], [0, 0, 1, 1], [], []>} : vector<8x8xbf16>, vector<8x8xbf16>, vector<8x8xf32> -> vector<8x8xf32>
    %30 = arith.truncf %29 : vector<8x8xf32> to vector<8x8xbf16>
    %c0_11 = arith.constant 0 : index
    %c0_12 = arith.constant 0 : index
    %31 = vector.load %arg4[%c0_11, %c0_12] : memref<32x32xbf16, #tpu.memory_space<vmem>>, vector<8x32xbf16>
    %cst_13 = arith.constant dense<0.000000e+00> : vector<8x32xf32>
    %32 = tpu.matmul %30, %31, %cst_13 {dimension_numbers = #tpu.dot_dimension_numbers<[1], [0], [0], [1], [0, 0, 1, 1], [], []>} : vector<8x8xbf16>, vector<8x32xbf16>, vector<8x32xf32> -> vector<8x32xf32>
    %33 = arith.addf %10, %32 : vector<8x32xf32>
    %34 = vector.extract_strided_slice %7 {offsets = [0, 8], sizes = [8, 8], strides = [1, 1]} : vector<8x32xf32> to vector<8x8xf32>
    %35 = arith.truncf %34 : vector<8x8xf32> to vector<8x8xbf16>
    %36 = vector.extract_strided_slice %8 {offsets = [0, 8], sizes = [8, 8], strides = [1, 1]} : vector<8x32xf32> to vector<8x8xf32>
    %37 = arith.truncf %36 : vector<8x8xf32> to vector<8x8xbf16>
    %38 = vector.extract_strided_slice %9 {offsets = [0, 8], sizes = [8, 8], strides = [1, 1]} : vector<8x32xf32> to vector<8x8xf32>
    %39 = arith.truncf %38 : vector<8x8xf32> to vector<8x8xbf16>
    %cst_14 = arith.constant dense<0.000000e+00> : vector<8x8xf32>
    %40 = tpu.matmul %35, %37, %cst_14 {dimension_numbers = #tpu.dot_dimension_numbers<[1], [1], [0], [0], [0, 0, 1, 0], [], []>} : vector<8x8xbf16>, vector<8x8xbf16>, vector<8x8xf32> -> vector<8x8xf32>
    %cst_15 = arith.constant dense<0xFF800000> : vector<8xf32>
    %41 = vector.multi_reduction <maximumf>, %40, %cst_15 [1] : vector<8x8xf32> to vector<8xf32>
    %42 = vector.shape_cast %41 : vector<8xf32> to vector<8x1xf32>
    %43 = vector.broadcast %42 : vector<8x1xf32> to vector<8x8xf32>
    %44 = arith.subf %40, %43 : vector<8x8xf32>
    %45 = math.exp %44 : vector<8x8xf32>
    %cst_16 = arith.constant dense<0.000000e+00> : vector<8xf32>
    %46 = vector.multi_reduction <add>, %45, %cst_16 [1] : vector<8x8xf32> to vector<8xf32>
    %47 = vector.shape_cast %46 : vector<8xf32> to vector<8x1xf32>
    %48 = tpu.reciprocal %47 {approx = true} : vector<8x1xf32> -> vector<8x1xf32>
    %49 = vector.broadcast %48 : vector<8x1xf32> to vector<8x8xf32>
    %50 = arith.mulf %45, %49 : vector<8x8xf32>
    %51 = arith.truncf %50 : vector<8x8xf32> to vector<8x8xbf16>
    %cst_17 = arith.constant dense<0.000000e+00> : vector<8x8xf32>
    %52 = tpu.matmul %51, %39, %cst_17 {dimension_numbers = #tpu.dot_dimension_numbers<[1], [0], [0], [1], [0, 0, 1, 1], [], []>} : vector<8x8xbf16>, vector<8x8xbf16>, vector<8x8xf32> -> vector<8x8xf32>
    %53 = arith.truncf %52 : vector<8x8xf32> to vector<8x8xbf16>
    %c8 = arith.constant 8 : index
    %c0_18 = arith.constant 0 : index
    %54 = vector.load %arg4[%c8, %c0_18] : memref<32x32xbf16, #tpu.memory_space<vmem>>, vector<8x32xbf16>
    %cst_19 = arith.constant dense<0.000000e+00> : vector<8x32xf32>
    %55 = tpu.matmul %53, %54, %cst_19 {dimension_numbers = #tpu.dot_dimension_numbers<[1], [0], [0], [1], [0, 0, 1, 1], [], []>} : vector<8x8xbf16>, vector<8x32xbf16>, vector<8x32xf32> -> vector<8x32xf32>
    %56 = arith.addf %33, %55 : vector<8x32xf32>
    %57 = vector.extract_strided_slice %7 {offsets = [0, 16], sizes = [8, 8], strides = [1, 1]} : vector<8x32xf32> to vector<8x8xf32>
    %58 = arith.truncf %57 : vector<8x8xf32> to vector<8x8xbf16>
    %59 = vector.extract_strided_slice %8 {offsets = [0, 16], sizes = [8, 8], strides = [1, 1]} : vector<8x32xf32> to vector<8x8xf32>
    %60 = arith.truncf %59 : vector<8x8xf32> to vector<8x8xbf16>
    %61 = vector.extract_strided_slice %9 {offsets = [0, 16], sizes = [8, 8], strides = [1, 1]} : vector<8x32xf32> to vector<8x8xf32>
    %62 = arith.truncf %61 : vector<8x8xf32> to vector<8x8xbf16>
    %cst_20 = arith.constant dense<0.000000e+00> : vector<8x8xf32>
    %63 = tpu.matmul %58, %60, %cst_20 {dimension_numbers = #tpu.dot_dimension_numbers<[1], [1], [0], [0], [0, 0, 1, 0], [], []>} : vector<8x8xbf16>, vector<8x8xbf16>, vector<8x8xf32> -> vector<8x8xf32>
    %cst_21 = arith.constant dense<0xFF800000> : vector<8xf32>
    %64 = vector.multi_reduction <maximumf>, %63, %cst_21 [1] : vector<8x8xf32> to vector<8xf32>
    %65 = vector.shape_cast %64 : vector<8xf32> to vector<8x1xf32>
    %66 = vector.broadcast %65 : vector<8x1xf32> to vector<8x8xf32>
    %67 = arith.subf %63, %66 : vector<8x8xf32>
    %68 = math.exp %67 : vector<8x8xf32>
    %cst_22 = arith.constant dense<0.000000e+00> : vector<8xf32>
    %69 = vector.multi_reduction <add>, %68, %cst_22 [1] : vector<8x8xf32> to vector<8xf32>
    %70 = vector.shape_cast %69 : vector<8xf32> to vector<8x1xf32>
    %71 = tpu.reciprocal %70 {approx = true} : vector<8x1xf32> -> vector<8x1xf32>
    %72 = vector.broadcast %71 : vector<8x1xf32> to vector<8x8xf32>
    %73 = arith.mulf %68, %72 : vector<8x8xf32>
    %74 = arith.truncf %73 : vector<8x8xf32> to vector<8x8xbf16>
    %cst_23 = arith.constant dense<0.000000e+00> : vector<8x8xf32>
    %75 = tpu.matmul %74, %62, %cst_23 {dimension_numbers = #tpu.dot_dimension_numbers<[1], [0], [0], [1], [0, 0, 1, 1], [], []>} : vector<8x8xbf16>, vector<8x8xbf16>, vector<8x8xf32> -> vector<8x8xf32>
    %76 = arith.truncf %75 : vector<8x8xf32> to vector<8x8xbf16>
    %c16 = arith.constant 16 : index
    %c0_24 = arith.constant 0 : index
    %77 = vector.load %arg4[%c16, %c0_24] : memref<32x32xbf16, #tpu.memory_space<vmem>>, vector<8x32xbf16>
    %cst_25 = arith.constant dense<0.000000e+00> : vector<8x32xf32>
    %78 = tpu.matmul %76, %77, %cst_25 {dimension_numbers = #tpu.dot_dimension_numbers<[1], [0], [0], [1], [0, 0, 1, 1], [], []>} : vector<8x8xbf16>, vector<8x32xbf16>, vector<8x32xf32> -> vector<8x32xf32>
    %79 = arith.addf %56, %78 : vector<8x32xf32>
    %80 = vector.extract_strided_slice %7 {offsets = [0, 24], sizes = [8, 8], strides = [1, 1]} : vector<8x32xf32> to vector<8x8xf32>
    %81 = arith.truncf %80 : vector<8x8xf32> to vector<8x8xbf16>
    %82 = vector.extract_strided_slice %8 {offsets = [0, 24], sizes = [8, 8], strides = [1, 1]} : vector<8x32xf32> to vector<8x8xf32>
    %83 = arith.truncf %82 : vector<8x8xf32> to vector<8x8xbf16>
    %84 = vector.extract_strided_slice %9 {offsets = [0, 24], sizes = [8, 8], strides = [1, 1]} : vector<8x32xf32> to vector<8x8xf32>
    %85 = arith.truncf %84 : vector<8x8xf32> to vector<8x8xbf16>
    %cst_26 = arith.constant dense<0.000000e+00> : vector<8x8xf32>
    %86 = tpu.matmul %81, %83, %cst_26 {dimension_numbers = #tpu.dot_dimension_numbers<[1], [1], [0], [0], [0, 0, 1, 0], [], []>} : vector<8x8xbf16>, vector<8x8xbf16>, vector<8x8xf32> -> vector<8x8xf32>
    %cst_27 = arith.constant dense<0xFF800000> : vector<8xf32>
    %87 = vector.multi_reduction <maximumf>, %86, %cst_27 [1] : vector<8x8xf32> to vector<8xf32>
    %88 = vector.shape_cast %87 : vector<8xf32> to vector<8x1xf32>
    %89 = vector.broadcast %88 : vector<8x1xf32> to vector<8x8xf32>
    %90 = arith.subf %86, %89 : vector<8x8xf32>
    %91 = math.exp %90 : vector<8x8xf32>
    %cst_28 = arith.constant dense<0.000000e+00> : vector<8xf32>
    %92 = vector.multi_reduction <add>, %91, %cst_28 [1] : vector<8x8xf32> to vector<8xf32>
    %93 = vector.shape_cast %92 : vector<8xf32> to vector<8x1xf32>
    %94 = tpu.reciprocal %93 {approx = true} : vector<8x1xf32> -> vector<8x1xf32>
    %95 = vector.broadcast %94 : vector<8x1xf32> to vector<8x8xf32>
    %96 = arith.mulf %91, %95 : vector<8x8xf32>
    %97 = arith.truncf %96 : vector<8x8xf32> to vector<8x8xbf16>
    %cst_29 = arith.constant dense<0.000000e+00> : vector<8x8xf32>
    %98 = tpu.matmul %97, %85, %cst_29 {dimension_numbers = #tpu.dot_dimension_numbers<[1], [0], [0], [1], [0, 0, 1, 1], [], []>} : vector<8x8xbf16>, vector<8x8xbf16>, vector<8x8xf32> -> vector<8x8xf32>
    %99 = arith.truncf %98 : vector<8x8xf32> to vector<8x8xbf16>
    %c24 = arith.constant 24 : index
    %c0_30 = arith.constant 0 : index
    %100 = vector.load %arg4[%c24, %c0_30] : memref<32x32xbf16, #tpu.memory_space<vmem>>, vector<8x32xbf16>
    %cst_31 = arith.constant dense<0.000000e+00> : vector<8x32xf32>
    %101 = tpu.matmul %99, %100, %cst_31 {dimension_numbers = #tpu.dot_dimension_numbers<[1], [0], [0], [1], [0, 0, 1, 1], [], []>} : vector<8x8xbf16>, vector<8x32xbf16>, vector<8x32xf32> -> vector<8x32xf32>
    %102 = arith.addf %79, %101 : vector<8x32xf32>
    %c0_32 = arith.constant 0 : index
    %c0_33 = arith.constant 0 : index
    %103 = vector.load %arg5[%c0_32, %c0_33] : memref<1x32xf32, #tpu.memory_space<vmem>>, vector<1x32xf32>
    %104 = vector.broadcast %103 : vector<1x32xf32> to vector<8x32xf32>
    %105 = arith.addf %102, %104 : vector<8x32xf32>
    %106 = arith.extf %1 : vector<8x32xbf16> to vector<8x32xf32>
    %107 = arith.addf %105, %106 : vector<8x32xf32>
    %cst_34 = arith.constant dense<0.000000e+00> : vector<8xf32>
    %108 = vector.multi_reduction <add>, %107, %cst_34 [1] : vector<8x32xf32> to vector<8xf32>
    %109 = vector.shape_cast %108 : vector<8xf32> to vector<8x1xf32>
    %cst_35 = arith.constant 3.200000e+01 : f32
    %110 = vector.broadcast %cst_35 : f32 to vector<8x1xf32>
    %111 = arith.divf %109, %110 : vector<8x1xf32>
    %112 = vector.broadcast %111 : vector<8x1xf32> to vector<8x32xf32>
    %113 = arith.subf %107, %112 : vector<8x32xf32>
    %114 = arith.mulf %113, %113 : vector<8x32xf32>
    %cst_36 = arith.constant dense<0.000000e+00> : vector<8xf32>
    %115 = vector.multi_reduction <add>, %114, %cst_36 [1] : vector<8x32xf32> to vector<8xf32>
    %116 = vector.shape_cast %115 : vector<8xf32> to vector<8x1xf32>
    %cst_37 = arith.constant 3.200000e+01 : f32
    %117 = vector.broadcast %cst_37 : f32 to vector<8x1xf32>
    %118 = arith.divf %116, %117 : vector<8x1xf32>
    %cst_38 = arith.constant 9.99999974E-6 : f32
    %119 = vector.broadcast %cst_38 : f32 to vector<8x1xf32>
    %120 = arith.addf %118, %119 : vector<8x1xf32>
    %121 = math.rsqrt %120 : vector<8x1xf32>
    %122 = vector.broadcast %121 : vector<8x1xf32> to vector<8x32xf32>
    %123 = arith.mulf %113, %122 : vector<8x32xf32>
    %c0_39 = arith.constant 0 : index
    %c0_40 = arith.constant 0 : index
    %124 = vector.load %arg6[%c0_39, %c0_40] : memref<1x32xf32, #tpu.memory_space<vmem>>, vector<1x32xf32>
    %125 = vector.broadcast %124 : vector<1x32xf32> to vector<8x32xf32>
    %126 = arith.mulf %123, %125 : vector<8x32xf32>
    %c0_41 = arith.constant 0 : index
    %c0_42 = arith.constant 0 : index
    %127 = vector.load %arg7[%c0_41, %c0_42] : memref<1x32xf32, #tpu.memory_space<vmem>>, vector<1x32xf32>
    %128 = vector.broadcast %127 : vector<1x32xf32> to vector<8x32xf32>
    %129 = arith.addf %126, %128 : vector<8x32xf32>
    %130 = arith.truncf %129 : vector<8x32xf32> to vector<8x32xbf16>
    %c0_43 = arith.constant 0 : index
    %c0_44 = arith.constant 0 : index
    %c0_45 = arith.constant 0 : index
    %131 = vector.load %arg8[%c0_43, %c0_44, %c0_45] : memref<1x8x32xbf16, #tpu.memory_space<vmem>>, vector<1x8x32xbf16>
    %132 = vector.shape_cast %131 : vector<1x8x32xbf16> to vector<8x32xbf16>
    %133 = vector.shape_cast %130 : vector<8x32xbf16> to vector<1x8x32xbf16>
    tpu.vector_store %arg8[%c0_43, %c0_44, %c0_45], %133 {strides = array<i32>} : memref<1x8x32xbf16, #tpu.memory_space<vmem>>, vector<1x8x32xbf16>,
    return
  }
  func.func @transform_0(%arg0: i32) -> (i32, i32, i32) {
    %c0_i32 = arith.constant 0 : i32
    %c0_i32_0 = arith.constant 0 : i32
    %c0_i32_1 = arith.constant 0 : i32
    return %arg0, %c0_i32, %c0_i32_0 : i32, i32, i32
  }
  func.func @transform_1(%arg0: i32) -> (i32, i32) {
    %c0_i32 = arith.constant 0 : i32
    %c0_i32_0 = arith.constant 0 : i32
    %c0_i32_1 = arith.constant 0 : i32
    return %c0_i32, %c0_i32_0 : i32, i32
  }
  func.func @transform_2(%arg0: i32) -> (i32, i32) {
    %c0_i32 = arith.constant 0 : i32
    %c0_i32_0 = arith.constant 0 : i32
    %c0_i32_1 = arith.constant 0 : i32
    return %c0_i32, %c0_i32_0 : i32, i32
  }
  func.func @transform_3(%arg0: i32) -> (i32, i32) {
    %c0_i32 = arith.constant 0 : i32
    %c0_i32_0 = arith.constant 0 : i32
    %c0_i32_1 = arith.constant 0 : i32
    return %c0_i32, %c0_i32_0 : i32, i32
  }
  func.func @transform_4(%arg0: i32) -> (i32, i32) {
    %c0_i32 = arith.constant 0 : i32
    %c0_i32_0 = arith.constant 0 : i32
    %c0_i32_1 = arith.constant 0 : i32
    return %c0_i32, %c0_i32_0 : i32, i32
  }
  func.func @transform_5(%arg0: i32) -> (i32, i32) {
    %c0_i32 = arith.constant 0 : i32
    %c0_i32_0 = arith.constant 0 : i32
    %c0_i32_1 = arith.constant 0 : i32
    return %c0_i32, %c0_i32_0 : i32, i32
  }
  func.func @transform_6(%arg0: i32) -> (i32, i32) {
    %c0_i32 = arith.constant 0 : i32
    %c0_i32_0 = arith.constant 0 : i32
    %c0_i32_1 = arith.constant 0 : i32
    return %c0_i32, %c0_i32_0 : i32, i32
  }
  func.func @transform_7(%arg0: i32) -> (i32, i32, i32) {
    %c0_i32 = arith.constant 0 : i32
    %c0_i32_0 = arith.constant 0 : i32
    %c0_i32_1 = arith.constant 0 : i32
    return %arg0, %c0_i32, %c0_i32_0 : i32, i32, i32
  }
}

</mosaic_0001>

<bundles_post_ra>
// kernel: tpu_custom_call.1
= control target key start
LH: loop header
LB: loop body
LE: loop exit
PB: predicated region body
PF: predicated region fallthrough
CT: control target
= control target key end

     0   :  { %12 = vsyncpa [#allocation3], 0  ;;  %s1976_s0 = inlined_call_operand.hbm [shape: bf16[2,8,32], index: 0, kind: input, shape index: {}]   ;;  %s1977_s1 = inlined_call_operand.hbm [shape: bf16[32,96], index: 1, kind: input, shape index: {}]   ;;  %s1978_s2 = inlined_call_operand.vmem [shape: f32[1,96], index: 2, kind: input, shape index: {}]   ;;  %s1979_s3 = inlined_call_operand.hbm [shape: bf16[32,32], index: 3, kind: input, shape index: {}]   ;;  %s1980_s4 = inlined_call_operand.vmem [shape: f32[1,32], index: 4, kind: input, shape index: {}]   ;;  %s1981_s5 = inlined_call_operand.vmem [shape: f32[1,32], index: 5, kind: input, shape index: {}]   ;;  %s1982_s6 = inlined_call_operand.vmem [shape: f32[1,32], index: 6, kind: input, shape index: {}]   ;;  %s1983_s7 = inlined_call_operand.hbm [shape: bf16[2,8,32], index: 7, kind: output, shape index: {}]  }
   0x1   :  { %14 = vsyncpa [#allocation3 + $0x1], 0 }
   0x2   :  { %15 = vsyncpa [#allocation6], 0 }
   0x3   :  { %16 = vsyncpa [#allocation4], 0 }
   0x4   :  { %18 = vsyncpa [#allocation4 + $0x1], 0  ;;  %s1635_s24 = smov 0   ;;  %s1637_s25 = smov 0  }
   0x5   :  { %s1639_s26 = smov 0   ;;  %s1641_s27 = smov 0  }
   0x6 LB: > { %s1656_s28 = sadd.s32 4294967295, %s1574_s27   ;;  %s1174_s29 = sadd.s32 4294967294, %s1574_s27   ;;  %s1574_s27 = sphi %s1641_s27, %s2003_s27   ;;  %s1570_s26 = sphi %s1639_s26, %s2002_s26   ;;  %s1566_s25 = sphi %s1637_s25, %s2001_s25   ;;  %s1562_s24 = sphi %s1635_s24, %s2000_s24  }
   0x7   : > { %p44_p0 = scmp.ne.s32.totalorder %s1566_s25, %s1562_s24  ;;  %p1984_p1 = scmp.eq.s32.totalorder %s1656_s28, 0 }
   0x8   : > { %p200_p3 = scmp.eq.s32.totalorder %s1174_s29, 1  ;;  %p1175_p5 = scmp.ge.s32.totalorder %s1574_s27, 1 }
   0x9   : > { %p1665_p4 = por %p1984_p1, %p44_p0  ;;  %p207_p7 = scmp.lt.s32.totalorder %s1574_s27, 3 }
   0xa   : > { %p1670_p6 = por %p200_p3, %p44_p0  ;;  %s1576_s10 = smov [#allocation5]  }
   0xb   : > { %s1987_s30 = scalar_select %p1665_p4, 1, 0 }
   0xc   : > { %s1988_s8 = scalar_select %p1670_p6, 1, 0 }
   0xd   : > { %p1675_p8 = pnand %p1175_p5, %p207_p7  ;;  %s219_s11 = sshll.u32 %s1576_s10, 4  ;;  %s1679_s11 = int_to_ptr.vmem [resolvable:$true] %s219_s11 }
   0xe   : > { %s1577_s13 = smov [#allocation7]   ;;  %s1418_s17 = scalar_lea.hbm %s1977_s1, 256 }
   0xf   : > { %p1328_p9 = pneg %p1675_p8  ;;  %s235_s14 = sshll.u32 %s1577_s13, 4  ;;  %s1690_s14 = int_to_ptr.vmem [resolvable:$true] %s235_s14 }
  0x10   : > { %p1419_p12 = scmp.ne.s32.totalorder %s1977_s1, %s1418_s17  ;;  %p1425_p5 = scmp.lt.u32.totalorder %s1418_s17, %s1977_s1 }
  0x11   : > { %p1686_p11 = pnand %p1328_p9, %p1984_p1 }
  0x13   : > { %p1420_p13 = pneg %p1686_p11 }
  0x15   : > { %p1421_p0 = pnand %p1420_p13, %p1419_p12 }
  0x17   : > { %p1422_p3 = pneg %p1421_p0 }
  0x19   : > { %p1427_p7 = pnand %p1425_p5, %p1422_p3 }
  0x1b   : > { %1430 = shalt.err (!%p1427_p7)
}
  0x1c   : > { %s1431_s22 = scalar_lea.vmem %s1679_s11, 256  ;;  %p1439_p2 = scmp.lt.s32.totalorder %s1679_s11, %s1679_s11 }
  0x1d   : > { %p1432_p9 = scmp.ne.s32.totalorder %s1679_s11, %s1431_s22  ;;  %p1440_p12 = scmp.lt.s32.totalorder %s1431_s22, %s1431_s22 }
  0x1f   : > { %p1434_p10 = pnand %p1432_p9, %p1420_p13  ;;  %p1441_p0 = por %p1440_p12, %p1439_p2 }
  0x21   : > { %p1435_p1 = pneg %p1434_p10 }
  0x23   : > { %p1442_p6 = pnand %p1441_p0, %p1435_p1 }
  0x25   : > { %1445 = shalt.err (!%p1442_p6)
}
  0x26   : > { %s1578_s23 = smov 64   ;;  %s1579_s29 = smov 4  }
  0x27   : > { %1331 = dma.hbm_to_vmem [thread:$0]  (!%p1686_p11), %s1977_s1, 256, %s1679_s11, [#allocation6], %s1578_s23, %s1578_s23, %s1579_s29  }
  0x28   : > { %s1446_s17 = scalar_lea.hbm %s1979_s3, 256 }
  0x29   : > { %p1447_p2 = scmp.ne.s32.totalorder %s1979_s3, %s1446_s17  ;;  %p1453_p10 = scmp.lt.u32.totalorder %s1446_s17, %s1979_s3 }
  0x2b   : > { %p1449_p1 = pnand %p1447_p2, %p1420_p13 }
  0x2d   : > { %p1450_p6 = pneg %p1449_p1 }
  0x2f   : > { %p1455_p3 = pnand %p1453_p10, %p1450_p6 }
  0x31   : > { %1458 = shalt.err (!%p1455_p3)
}
  0x32   : > { %s1459_s11 = scalar_lea.vmem %s1690_s14, 256  ;;  %p1467_p12 = scmp.lt.s32.totalorder %s1690_s14, %s1690_s14 }
  0x33   : > { %p1460_p5 = scmp.ne.s32.totalorder %s1690_s14, %s1459_s11  ;;  %p1468_p0 = scmp.lt.s32.totalorder %s1459_s11, %s1459_s11 }
  0x35   : > { %p1462_p7 = pnand %p1460_p5, %p1420_p13  ;;  %p1469_p2 = por %p1468_p0, %p1467_p12 }
  0x37   : > { %p1463_p9 = pneg %p1462_p7 }
  0x39   : > { %p1470_p1 = pnand %p1469_p2, %p1463_p9 }
  0x3b   : > { %1473 = shalt.err (!%p1470_p1)
}
  0x3c   : > { %1334 = dma.hbm_to_vmem [thread:$0]  (!%p1686_p11), %s1979_s3, 256, %s1690_s14, [#allocation6], %s1578_s23, %s1578_s23, %s1579_s29  }
  0x3d   : > { %s1745_s13 = sadd.s32 1, %s1574_s27   ;;  %s31_s12 = sadd.s32 1, %s1570_s26 }
  0x3e   : > { %s28_s15 = ssub.s32 %s1574_s27, %s1745_s13  ;;  %p38_p13 = scmp.ne.s32.totalorder %s1570_s26, %s1566_s25 }
  0x3f   : > { %p29_p6 = scmp.eq.s32.totalorder %s28_s15, 0  ;;  %p39_p10 = scmp.eq.s32.totalorder %s1574_s27, 0 }
  0x40   : > { %p1991_p3 = scmp.eq.s32.totalorder %s1656_s28, 1  ;;  %p1345_p7 = scmp.lt.s32.totalorder %s1574_s27, 2 }
  0x41   : > { %s1761_s17 = scalar_select %p29_p6, %s1570_s26, %s31_s12  }
  0x42   : > { %p1755_p5 = por %p1991_p3, %p38_p13  ;;  %p40_p9 = por %p39_p10, %p38_p13 }
  0x43   : > { %s258_s18 = sand.u32 1, %s1570_s26   ;;  %s1180_s14 = sshll.u32 %s1574_s27, 6 }
  0x44   : > { %s1992_s16 = scalar_select %p1755_p5, 1, 0 }
  0x45   : > { %s1179_s19 = sshll.u32 %s258_s18, 2  ;;  %s1768_s20 = scalar_lea.hbm %s1976_s0, %s1180_s14 }
  0x46   : > { %s262_s21 = scalar_lea.vmem [#allocation2], %s1179_s19  ;;  %p1772_p11 = pnand %p1345_p7, %p40_p9 }
  0x47   : > { %s269_s11 = sshll.u32 %s262_s21, 4  ;;  %s259_s10 = scalar_lea.sflag [#allocation3], %s258_s18  ;;  %s1770_s11 = int_to_ptr.vmem [resolvable:$true] %s269_s11 }
  0x48   : > { %s1474_s12 = scalar_lea.hbm %s1768_s20, 64  ;;  %p1476_p0 = pneg %p1772_p11 }
  0x49   : > { %p1475_p12 = scmp.ne.s32.totalorder %s1768_s20, %s1474_s12  ;;  %s1479_s14 = scalar_lea.hbm %s1976_s0, 128 }
  0x4a   : > { %p1480_p13 = scmp.lt.u32.totalorder %s1768_s20, %s1976_s0  ;;  %p1481_p6 = scmp.lt.u32.totalorder %s1479_s14, %s1474_s12 }
  0x4b   : > { %p1477_p2 = pnand %p1476_p0, %p1475_p12  ;;  %p1483_p3 = scmp.lt.u32.totalorder %s1474_s12, %s1768_s20 }
  0x4c   : > { %p1482_p10 = por %p1481_p6, %p1480_p13 }
  0x4d   : > { %p1478_p1 = pneg %p1477_p2 }
  0x4e   : > { %p1484_p7 = por %p1483_p3, %p1482_p10 }
  0x50   : > { %p1485_p9 = pnand %p1484_p7, %p1478_p1 }
  0x52   : > { %1488 = shalt.err (!%p1485_p9)
}
  0x53   : > { %s1489_s18 = scalar_lea.vmem %s1770_s11, 64  ;;  %s1580_s21 = smov [#allocation2]  }
  0x54   : > { %p1490_p12 = scmp.ne.s32.totalorder %s1770_s11, %s1489_s18  ;;  %s1494_s15 = sshll.u32 %s1580_s21, 4  ;;  %s1495_s15 = int_to_ptr.vmem [resolvable:$false] %s1494_s15 }
  0x55   : > { %s1496_s19 = scalar_lea.vmem %s1495_s15, 128  ;;  %p1497_p4 = scmp.lt.s32.totalorder %s1770_s11, %s1495_s15 }
  0x56   : > { %p1492_p2 = pnand %p1490_p12, %p1476_p0  ;;  %p1498_p13 = scmp.lt.s32.totalorder %s1496_s19, %s1489_s18 }
  0x58   : > { %p1493_p5 = pneg %p1492_p2  ;;  %p1499_p6 = por %p1498_p13, %p1497_p4 }
  0x5a   : > { %p1500_p10 = pnand %p1499_p6, %p1493_p5 }
  0x5c   : > { %1503 = shalt.err (!%p1500_p10)
}
  0x5d   : > { %1338 = dma.hbm_to_vmem [thread:$0]  (!%p1772_p11), %s1768_s20, 64, %s1770_s11, %s259_s10  }
  0x5e   : > { %278 = sbr.rel (%p1675_p8) target bundleno = 3037 (0xbdd), region = 48  ;;  %s1804_s12 = sand.u32 (!%p1675_p8), 1, %s1566_s25  }
  0x5f   : > { %s1182_s14 = sshll.u32 (!%p1675_p8), %s1804_s12, 2  ;;  %s281_s23 = scalar_lea.sflag (!%p1675_p8), [#allocation3], %s1804_s12 }
  0x60   : > { %s284_s29 = scalar_lea.vmem (!%p1675_p8), [#allocation2], %s1182_s14  ;;  %p1994_p4 = scmp.ne.s32.totalorder (!%p1675_p8), %s1987_s30, 0 }
  0x65   : > { %1549 = dma.done.wait (%p1994_p4), %s281_s23, 64  }
  0x66   : > { %1551 = vsyncadd (%p1994_p4), %s281_s23, 4294967232  ;;  %p1995_p5 = scmp.eq.s32.totalorder %s1656_s28, 0 }
  0x68   : > { %1553 = dma.done.wait (%p1995_p5), [#allocation6], 512   ;;  %p1996_p8 = pmov %p1995_p5 }
  0x69   : > { %v1581_v0 = vmov 0.0   ;;  %vm1582_vm0 = vmmov 0   ;;  %v1398_v1 = vld [vmem:[#allocation5] sm:$0xff]   ;;  %v1399_v2 = vld [vmem:[#allocation5 + $0x8] sm:$0xff]   ;;  %v1825_v3 = vld [vmem:[%s284_s29] sm:$0xf] }
  0x6a   : > { %1555 = vsyncadd (%p1996_p8), [#allocation6], 4294966784  ;;  %1236 = vmatprep.subr.bf16.mxu0 %v1581_v0  ;;  %1240 = vmatprep.mubr.msk.bf16.mxu0 %vm1582_vm0, %v1581_v0  ;;  %vm348_vm1 = vcmask 261120   ;;  %v1186_v4 = vld [vmem:[%s1978_s2] ss:$0 sm:$0xff]  ;;  %s1583_s20 = smov 120  }
  0x6b   : > { %1244 = vmatprep.subr.bf16.mxu1 %v1581_v0  ;;  %1246 = vmatprep.mubr.msk.bf16.mxu1 %vm1582_vm0, %v1581_v0  ;;  %s1584_s11 = smov 96   ;;  %s1585_s22 = smov 88   ;;  %vm396_vm2 = vcmask 64512   ;;  %vm460_vm3 = vcmask 1043456   ;;  %v505_v48 = vld [vmem:[#allocation7] sm:$0xf] }
  0x6c   : > { %1237 = vmatpush3.bf16.msra.mxu0 %v1398_v1  ;;  %s1586_s10 = smov 64   ;;  %s1587_s18 = smov 56   ;;  %v668_v49 = vsel %vm460_vm3, %v505_v48, 0  ;;  %v617_v50 = vld [vmem:[#allocation7 + $0x4] sm:$0xf]  ;;  %vm1069_vm4 = vcmask 257024  }
  0x6d   : > { %1238 = vmatprep.subr.bf16.mxu0 %v1581_v0  ;;  %s1588_s21 = smov 112   ;;  %s1589_s15 = smov 80   ;;  %v622_v51 = vsel %vm460_vm3, %v617_v50, 0  ;;  %v980_v50 = vld [vmem:[#allocation7 + $0xc] sm:$0xf] }
  0x6e   : > { %s1590_s19 = smov 72   ;;  %s1591_s23 = smov 104  }
  0x6f   : > { %s1592_s29 = smov 48   ;;  %s1593_s30 = smov 40  }
  0x70   : > { %1239 = vmatpush3.bf16.msra.mxu0 %v1399_v2  ;;  %s1072_s9 = scalar_lea.sflag [#allocation4], %s1804_s12  ;;  %p1997_p0 = scmp.ne.s32.totalorder %s1992_s16, 0 }
  0x71   : > { %1250 = vmatprep.subr.bf16.mxu0 %v1581_v0 }
  0x73   : > { %1241 = vmatmul.mubr.msk.bf16.vlgmr.msra.gmra.mrb[0].mxu0 %vm348_vm1, %v1825_v3 }
  0x74   : > { %1252 = vmatprep.mubr.msk.bf16.mxu0 %vm1582_vm0, %v1581_v0 }
 0x146   : > { %v386_v5 = vpop.f32.mrb[0].mxu0 }
 0x147   : > { %v387_v6 = vadd.f32 %v1186_v4, %v386_v5  ;;  %v1242_v7 = vpop.f32.mrb[1].mxu0 }
 0x148   : > { %v389_v8 = vpop.f32.mrb[2].mxu0 }
 0x149   : > { %v1835_v9 = vpack.c.bf16 %v387_v6, %v387_v6  ;;  %v1243_v10 = vpop.f32.mrb[3].mxu0 }
 0x14b   : > { %506 = vrot.lane.b32.xlu1 %v1835_v9, %s1583_s20  ;;  %394 = vrot.lane.b32.xlu0 %v1835_v9, %s1584_s11 }
 0x14f   : > { %508 = vrot.lane.b32.xlu0 %v1835_v9, %s1585_s22 }
 0x1bd   : > { %v395_v11 = vpop.permute.xlu0 %394  ;;  %v507_v15 = vpop.permute.xlu1 %506 }
 0x1be   : > { %v401_v12 = vsel %vm396_vm2, %v395_v11, 0 }
 0x1bf   : > { %1245 = vmatpush3.bf16.xpose.msra.mxu1 %v401_v12 }
 0x1c0   : > { %1256 = vmatprep.subr.bf16.mxu1 %v1581_v0 }
 0x1c1   : > { %v509_v13 = vpop.permute.xlu0 %508 }
 0x1c2   : > { %v514_v14 = vsel %vm396_vm2, %v509_v13, 0 }
 0x1c6   : > { %1247 = vmatmul.mubr.msk.bf16.vlgmr.msra.gmra.mrb[0].mxu1 %vm396_vm2, %v1835_v9 }
 0x1c7   : > { %1257 = vmatpush3.bf16.xpose.msra.mxu1 %v514_v14  ;;  %1258 = vmatprep.mubr.msk.bf16.mxu1 %vm1582_vm0, %v1581_v0 }
 0x1c8   : > { %1268 = vmatprep.subr.bf16.mxu1 %v1581_v0 }
 0x1ce   : > { %1259 = vmatmul.mubr.msk.bf16.vlgmr.msra.gmra.mrb[4].mxu1 %vm396_vm2, %v507_v15 }
 0x1cf   : > { %1270 = vmatprep.mubr.msk.bf16.mxu1 %vm1582_vm0, %v1581_v0  ;;  %1269 = vmatpush3.bf16.msra.mxu1 %v622_v51  ;;  %v985_v51 = vsel %vm460_vm3, %v980_v50, 0 }
 0x1d0   : > { %1280 = vmatprep.subr.bf16.mxu1 %v1581_v0 }
 0x299   : > { %v437_v16 = vpop.f32.mrb[0].mxu1 }
 0x29a   : > { %v1248_v17 = vpop.f32.mrb[1].mxu1  ;;  %v443_v18 = vsel %vm396_vm2, %v437_v16, -inf }
 0x29b   : > { %444 = vmax.xlane.f32.xlu1 %v443_v18  ;;  %v440_v19 = vpop.f32.mrb[2].mxu1 }
 0x29c   : > { %v1249_v20 = vpop.f32.mrb[3].mxu1 }
 0x2a1   : > { %v550_v21 = vpop.f32.mrb[4].mxu1 }
 0x2a2   : > { %v1260_v22 = vpop.f32.mrb[5].mxu1  ;;  %v556_v23 = vsel %vm396_vm2, %v550_v21, -inf }
 0x2a3   : > { %557 = vmax.xlane.f32.xlu0 %v556_v23  ;;  %v553_v24 = vpop.f32.mrb[6].mxu1 }
 0x2a4   : > { %v1261_v25 = vpop.f32.mrb[7].mxu1 }
 0x328   : > { %v445_v26 = vpop.xlane.xlu1 %444 }
 0x329   : > { %v446_v27 = vsub.f32 %v437_v16, %v445_v26 }
 0x32b   : > { %v447_v28 = vmul.f32 1.442695, %v446_v27 }
 0x32d   : > { %1400 = vpow2.f32 %v447_v28 }
 0x330   : > { %v558_v29 = vpop.xlane.xlu0 %557 }
 0x331   : > { %v559_v30 = vsub.f32 %v550_v21, %v558_v29 }
 0x333   : > { %v560_v31 = vmul.f32 1.442695, %v559_v30 }
 0x335   : > { %1402 = vpow2.f32 %v560_v31 }
 0x337   : > { %v1401_v32 = vpop.eup %1400 }
 0x338   : > { %v449_v33 = vsel %vm396_vm2, %v1401_v32, 0.0 }
 0x339   : > { %450 = vadd.xlane.f32.xlu0 %v449_v33 }
 0x33f   : > { %v1403_v34 = vpop.eup %1402 }
 0x340   : > { %v562_v35 = vsel %vm396_vm2, %v1403_v34, 0.0 }
 0x341   : > { %563 = vadd.xlane.f32.xlu1 %v562_v35 }
 0x34f   : > { %455 = vrot.lane.b32.xlu0 %v1835_v9, %s1586_s10 }
 0x352   : > { %568 = vrot.lane.b32.xlu1 %v1835_v9, %s1587_s18 }
 0x353   : > { %710 = vrot.lane.b32.xlu0 %v1835_v9, %s1588_s21  ;;  %s1206_s21 = sshll.u32 %s1656_s28, 6  ;;  %s1594_s28 = smov [#allocation8]  }
 0x356   : > { %712 = vrot.lane.b32.xlu1 %v1835_v9, %s1589_s15  ;;  %s322_s15 = scalar_lea.vmem [#allocation8], %s1182_s14  ;;  %s1508_s14 = sshll.u32 %s1594_s28, 4  ;;  %s1509_s14 = int_to_ptr.vmem [resolvable:$false] %s1508_s14 }
 0x357   : > { %s1510_s11 = scalar_lea.vmem %s1509_s14, 128 }
 0x3c6   : > { %v451_v36 = vpop.xlane.xlu0 %450 }
 0x3c7   : > { %1404 = vrcp.f32 %v451_v36 }
 0x3ca   : > { %v456_v37 = vpop.permute.xlu0 %455 }
 0x3cb   : > { %v462_v38 = vsel %vm460_vm3, %v456_v37, 0 }
 0x3cc   : > { %1251 = vmatpush3.bf16.msra.mxu0 %v462_v38 }
 0x3cd   : > { %1262 = vmatprep.subr.bf16.mxu0 %v1581_v0 }
 0x3ce   : > { %v564_v39 = vpop.xlane.xlu1 %563  ;;  %v711_v1 = vpop.permute.xlu0 %710 }
 0x3cf   : > { %1406 = vrcp.f32 %v564_v39 }
 0x3d1   : > { %v1405_v40 = vpop.eup %1404 }
 0x3d2   : > { %v453_v41 = vmul.f32 %v1405_v40, %v1401_v32  ;;  %v569_v42 = vpop.permute.xlu1 %568  ;;  %v821_v32 = vld [vmem:[#allocation7 + $0x8] sm:$0xf] }
 0x3d3   : > { %v574_v44 = vsel %vm460_vm3, %v569_v42, 0  ;;  %v826_v33 = vsel %vm460_vm3, %v821_v32, 0 }
 0x3d4   : > { %v454_v43 = vpack.c.bf16 %v453_v41, %v453_v41 }
 0x3d6   : > { %1253 = vmatmul.mubr.msk.bf16.vlgmr.msra.gmra.mrb[4].mxu0 %vm396_vm2, %v454_v43  ;;  %v713_v57 = vpop.permute.xlu1 %712 }
 0x3d7   : > { %1263 = vmatpush3.bf16.msra.mxu0 %v574_v44  ;;  %1264 = vmatprep.mubr.msk.bf16.mxu0 %vm1582_vm0, %v1581_v0  ;;  %v718_v62 = vsel %vm396_vm2, %v713_v57, 0 }
 0x3d8   : > { %1274 = vmatprep.subr.bf16.mxu0 %v1581_v0 }
 0x3d9   : > { %v1407_v45 = vpop.eup %1406 }
 0x3da   : > { %v566_v46 = vmul.f32 %v1407_v45, %v1403_v34 }
 0x3dc   : > { %v567_v47 = vpack.c.bf16 %v566_v46, %v566_v46 }
 0x3de   : > { %1265 = vmatmul.mubr.msk.bf16.vlgmr.msra.gmra.mrb[8].mxu0 %vm396_vm2, %v567_v47 }
 0x3df   : > { %1276 = vmatprep.mubr.msk.bf16.mxu0 %vm1582_vm0, %v1581_v0  ;;  %1275 = vmatpush3.bf16.msra.mxu0 %v668_v49 }
 0x3e0   : > { %1286 = vmatprep.subr.bf16.mxu0 %v1581_v0 }
 0x4a9   : > { %v498_v52 = vpop.f32.mrb[4].mxu0 }
 0x4aa   : > { %v504_v53 = vpack.c.bf16 %v498_v52, %v498_v52  ;;  %v1254_v54 = vpop.f32.mrb[5].mxu0 }
 0x4ab   : > { %v501_v55 = vpop.f32.mrb[6].mxu0 }
 0x4ac   : > { %v1255_v56 = vpop.f32.mrb[7].mxu0  ;;  %1277 = vmatmul.mubr.msk.bf16.vlgmr.msra.gmra.mrb[12].mxu0 %vm396_vm2, %v504_v53 }
 0x4ad   : > { %1288 = vmatprep.mubr.msk.bf16.mxu0 %vm1582_vm0, %v1581_v0 }
 0x4b1   : > { %v610_v58 = vpop.f32.mrb[8].mxu0 }
 0x4b2   : > { %v616_v59 = vpack.c.bf16 %v610_v58, %v610_v58  ;;  %v1266_v60 = vpop.f32.mrb[9].mxu0 }
 0x4b3   : > { %v613_v61 = vpop.f32.mrb[10].mxu0 }
 0x4b4   : > { %v1267_v63 = vpop.f32.mrb[11].mxu0  ;;  %1271 = vmatmul.mubr.msk.bf16.vlgmr.msra.gmra.mrb[8].mxu1 %vm396_vm2, %v616_v59 }
 0x4b5   : > { %1281 = vmatpush3.bf16.xpose.msra.mxu1 %v718_v62  ;;  %1282 = vmatprep.mubr.msk.bf16.mxu1 %vm1582_vm0, %v1581_v0 }
 0x4b6   : > { %1292 = vmatprep.subr.bf16.mxu1 %v1581_v0 }
 0x4bc   : > { %1283 = vmatmul.mubr.msk.bf16.vlgmr.msra.gmra.mrb[12].mxu1 %vm396_vm2, %v711_v1 }
 0x4bd   : > { %1294 = vmatprep.mubr.msk.bf16.mxu1 %vm1582_vm0, %v1581_v0  ;;  %1293 = vmatpush3.bf16.msra.mxu1 %v826_v33 }
 0x4be   : > { %1304 = vmatprep.subr.bf16.mxu1 %v1581_v0 }
 0x57f   : > { %v704_v2 = vpop.f32.mrb[12].mxu0 }
 0x580   : > { %v1278_v4 = vpop.f32.mrb[13].mxu0 }
 0x581   : > { %v707_v5 = vpop.f32.mrb[14].mxu0  ;;  %v1202_v4 = vld [vmem:[%s1980_s4] ss:$0 sm:$0xff] }
 0x582   : > { %v1279_v6 = vpop.f32.mrb[15].mxu0 }
 0x587   : > { %v658_v7 = vpop.f32.mrb[8].mxu1 }
 0x588   : > { %v1884_v8 = vadd.f32 %v704_v2, %v658_v7  ;;  %v1272_v10 = vpop.f32.mrb[9].mxu1  ;;  %v1036_v7 = vunpack.c.l.bf16 %v1825_v3 }
 0x589   : > { %v661_v11 = vpop.f32.mrb[10].mxu1 }
 0x58a   : > { %v1273_v12 = vpop.f32.mrb[11].mxu1 }
 0x58f   : > { %v754_v13 = vpop.f32.mrb[12].mxu1 }
 0x590   : > { %v1284_v14 = vpop.f32.mrb[13].mxu1  ;;  %v760_v15 = vsel %vm396_vm2, %v754_v13, -inf }
 0x591   : > { %761 = vmax.xlane.f32.xlu1 %v760_v15  ;;  %v757_v16 = vpop.f32.mrb[14].mxu1 }
 0x592   : > { %v1285_v17 = vpop.f32.mrb[15].mxu1 }
 0x5a2   : > { %871 = vrot.lane.b32.xlu1 %v1835_v9, %s1590_s19  ;;  %s1085_s19 = sshll.u32 %s322_s15, 4  ;;  %s1934_s19 = int_to_ptr.vmem [resolvable:$true] %s1085_s19 }
 0x5a3   : > { %s1504_s20 = scalar_lea.vmem %s1934_s19, 64  ;;  %p1511_p7 = scmp.lt.s32.totalorder %s1934_s19, %s1509_s14 }
 0x5a4   : > { %p1505_p11 = scmp.ne.s32.totalorder %s1934_s19, %s1504_s20  ;;  %p1512_p9 = scmp.lt.s32.totalorder %s1510_s11, %s1504_s20 }
 0x5a6   : > { %869 = vrot.lane.b32.xlu1 %v1835_v9, %s1591_s23  ;;  %p1506_p1 = pnand %p1505_p11, %p1997_p0  ;;  %p1513_p12 = por %p1512_p9, %p1511_p7 }
 0x5a8   : > { %p1507_p3 = pneg %p1506_p1 }
 0x5aa   : > { %p1514_p2 = pnand %p1513_p12, %p1507_p3 }
 0x61e   : > { %v762_v18 = vpop.xlane.xlu1 %761 }
 0x61f   : > { %v763_v19 = vsub.f32 %v754_v13, %v762_v18 }
 0x621   : > { %v764_v20 = vmul.f32 1.442695, %v763_v19 }
 0x622   : > { %v872_v28 = vpop.permute.xlu1 %871 }
 0x623   : > { %1408 = vpow2.f32 %v764_v20  ;;  %v877_v30 = vsel %vm396_vm2, %v872_v28, 0 }
 0x626   : > { %v870_v31 = vpop.permute.xlu1 %869 }
 0x62d   : > { %v1409_v21 = vpop.eup %1408 }
 0x62e   : > { %v766_v22 = vsel %vm396_vm2, %v1409_v21, 0.0 }
 0x62f   : > { %767 = vadd.xlane.f32.xlu0 %v766_v22  ;;  %v1203_v22 = vld [vmem:[%s1981_s5] ss:$0 sm:$0xff] }
 0x645   : > { %772 = vrot.lane.b32.xlu0 %v1835_v9, %s1592_s29 }
 0x6bc   : > { %v768_v23 = vpop.xlane.xlu0 %767 }
 0x6bd   : > { %1410 = vrcp.f32 %v768_v23 }
 0x6c0   : > { %v773_v24 = vpop.permute.xlu0 %772 }
 0x6c1   : > { %v778_v25 = vsel %vm460_vm3, %v773_v24, 0  ;;  %v1204_v24 = vld [vmem:[%s1982_s6] ss:$0 sm:$0xff] }
 0x6c2   : > { %1287 = vmatpush3.bf16.msra.mxu0 %v778_v25 }
 0x6c3   : > { %1298 = vmatprep.subr.bf16.mxu0 %v1581_v0 }
 0x6c7   : > { %v1411_v26 = vpop.eup %1410 }
 0x6c8   : > { %v770_v27 = vmul.f32 %v1411_v26, %v1409_v21 }
 0x6ca   : > { %v771_v29 = vpack.c.bf16 %v770_v27, %v770_v27 }
 0x6cc   : > { %1289 = vmatmul.mubr.msk.bf16.vlgmr.msra.gmra.mrb[16].mxu0 %vm396_vm2, %v771_v29 }
 0x6cd   : > { %1299 = vmatpush3.bf16.xpose.msra.mxu0 %v877_v30  ;;  %1300 = vmatprep.mubr.msk.bf16.mxu0 %vm1582_vm0, %v1581_v0 }
 0x6ce   : > { %1310 = vmatprep.subr.bf16.mxu0 %v1581_v0 }
 0x6d4   : > { %1301 = vmatmul.mubr.msk.bf16.vlgmr.msra.gmra.mrb[20].mxu0 %vm396_vm2, %v870_v31 }
 0x6d5   : > { %1312 = vmatprep.mubr.msk.bf16.mxu0 %vm1582_vm0, %v1581_v0  ;;  %1311 = vmatpush3.bf16.msra.mxu0 %v985_v51 }
 0x79f   : > { %v814_v34 = vpop.f32.mrb[16].mxu0 }
 0x7a0   : > { %v820_v35 = vpack.c.bf16 %v814_v34, %v814_v34  ;;  %v1290_v36 = vpop.f32.mrb[17].mxu0 }
 0x7a1   : > { %v817_v37 = vpop.f32.mrb[18].mxu0 }
 0x7a2   : > { %v1291_v38 = vpop.f32.mrb[19].mxu0  ;;  %1295 = vmatmul.mubr.msk.bf16.vlgmr.msra.gmra.mrb[16].mxu1 %vm396_vm2, %v820_v35 }
 0x7a3   : > { %1306 = vmatprep.mubr.msk.bf16.mxu1 %vm1582_vm0, %v1581_v0 }
 0x7a7   : > { %v913_v39 = vpop.f32.mrb[20].mxu0 }
 0x7a8   : > { %v1302_v40 = vpop.f32.mrb[21].mxu0  ;;  %v919_v41 = vsel %vm396_vm2, %v913_v39, -inf }
 0x7a9   : > { %920 = vmax.xlane.f32.xlu0 %v919_v41  ;;  %v916_v42 = vpop.f32.mrb[22].mxu0 }
 0x7aa   : > { %v1303_v43 = vpop.f32.mrb[23].mxu0 }
 0x7bf   : > { %931 = vrot.lane.b32.xlu0 %v1835_v9, %s1593_s30  ;;  %s1932_s30 = scalar_lea.hbm %s1983_s7, %s1206_s21 }
 0x836   : > { %v921_v44 = vpop.xlane.xlu0 %920 }
 0x837   : > { %v922_v45 = vsub.f32 %v913_v39, %v921_v44 }
 0x839   : > { %v923_v46 = vmul.f32 1.442695, %v922_v45 }
 0x83a   : > { %v932_v47 = vpop.permute.xlu0 %931 }
 0x83b   : > { %1412 = vpow2.f32 %v923_v46  ;;  %v937_v48 = vsel %vm460_vm3, %v932_v47, 0 }
 0x83c   : > { %1305 = vmatpush3.bf16.msra.mxu1 %v937_v48 }
 0x845   : > { %v1413_v49 = vpop.eup %1412 }
 0x846   : > { %v925_v0 = vsel %vm396_vm2, %v1413_v49, 0.0 }
 0x847   : > { %926 = vadd.xlane.f32.xlu1 %v925_v0 }
 0x875   : > { %v862_v52 = vpop.f32.mrb[16].mxu1 }
 0x876   : > { %v868_v53 = vadd.f32 %v862_v52, %v1884_v8  ;;  %v1296_v9 = vpop.f32.mrb[17].mxu1 }
 0x877   : > { %v865_v54 = vpop.f32.mrb[18].mxu1 }
 0x878   : > { %v1297_v55 = vpop.f32.mrb[19].mxu1 }
 0x8d4   : > { %v927_v56 = vpop.xlane.xlu1 %926 }
 0x8d5   : > { %1414 = vrcp.f32 %v927_v56 }
 0x8df   : > { %v1415_v57 = vpop.eup %1414 }
 0x8e0   : > { %v929_v58 = vmul.f32 %v1415_v57, %v1413_v49 }
 0x8e2   : > { %v930_v59 = vpack.c.bf16 %v929_v58, %v929_v58 }
 0x8e4   : > { %1307 = vmatmul.mubr.msk.bf16.vlgmr.msra.gmra.mrb[20].mxu1 %vm396_vm2, %v930_v59 }
 0x9b7   : > { %v973_v60 = vpop.f32.mrb[20].mxu1 }
 0x9b8   : > { %v979_v61 = vpack.c.bf16 %v973_v60, %v973_v60  ;;  %v1308_v62 = vpop.f32.mrb[21].mxu1 }
 0x9b9   : > { %v976_v63 = vpop.f32.mrb[22].mxu1 }
 0x9ba   : > { %v1309_v1 = vpop.f32.mrb[23].mxu1  ;;  %1313 = vmatmul.mubr.msk.bf16.vlgmr.msra.gmra.mrb[24].mxu0 %vm396_vm2, %v979_v61 }
 0xa8d   : > { %v1021_v2 = vpop.f32.mrb[24].mxu0 }
 0xa8e   : > { %v1027_v5 = vadd.f32 %v1021_v2, %v868_v53  ;;  %v1314_v6 = vpop.f32.mrb[25].mxu0 }
 0xa8f   : > { %v1024_v8 = vpop.f32.mrb[26].mxu0 }
 0xa90   : > { %v1035_v10 = vadd.f32 %v1202_v4, %v1027_v5  ;;  %v1315_v11 = vpop.f32.mrb[27].mxu0 }
 0xa92   : > { %v1037_v12 = vadd.f32 %v1036_v7, %v1035_v10 }
 0xa94   : > { %v1038_v13 = vsel %vm348_vm1, %v1037_v12, 0.0 }
 0xa95   : > { %1039 = vadd.xlane.f32.xlu1 %v1038_v13 }
 0xb22   : > { %v1040_v14 = vpop.xlane.xlu1 %1039 }
 0xb23   : > { %v1042_v15 = vmul.f32 0.03125, %v1040_v14 }
 0xb25   : > { %v1043_v16 = vsub.f32 %v1037_v12, %v1042_v15 }
 0xb27   : > { %v1044_v17 = vmul.f32 %v1043_v16, %v1043_v16 }
 0xb29   : > { %v1045_v18 = vsel %vm348_vm1, %v1044_v17, 0.0 }
 0xb2a   : > { %1046 = vadd.xlane.f32.xlu1 %v1045_v18 }
 0xbb7   : > { %v1047_v19 = vpop.xlane.xlu1 %1046 }
 0xbb8   : > { %v1048_v20 = vmul.f32 0.03125, %v1047_v19 }
 0xbba   : > { %v1049_v21 = vadd.f32 1e-05, %v1048_v20 }
 0xbbc   : > { %1416 = vrsqrt.f32 %v1049_v21 }
 0xbc6   : > { %v1417_v3 = vpop.eup %1416 }
 0xbc7   : > { %v1051_v23 = vmul.f32 %v1417_v3, %v1043_v16 }
 0xbc9   : > { %v1059_v25 = vmul.f32 %v1203_v22, %v1051_v23 }
 0xbcb   : > { %v1067_v26 = vadd.f32 %v1204_v24, %v1059_v25 }
 0xbcd   : > { %v1068_v27 = vpack.c.bf16 %v1067_v26, %v1067_v26 }
 0xbcf   : > { %1070 = vst.msk [vmem:[%s322_s15] sm:$0xf] %vm1069_vm4, %v1068_v27 }
 0xbd0   : > { %1517 = shalt.err (!%p1514_p2)
}
 0xbd1   : > { %s1518_s12 = scalar_lea.hbm %s1932_s30, 64  ;;  %s1522_s18 = scalar_lea.hbm %s1983_s7, 128 }
 0xbd2   : > { %p1519_p13 = scmp.ne.s32.totalorder %s1932_s30, %s1518_s12  ;;  %p1523_p4 = scmp.lt.u32.totalorder %s1932_s30, %s1983_s7 }
 0xbd3   : > { %p1524_p5 = scmp.lt.u32.totalorder %s1522_s18, %s1518_s12  ;;  %p1526_p11 = scmp.lt.u32.totalorder %s1518_s12, %s1932_s30 }
 0xbd4   : > { %p1520_p6 = pnand %p1519_p13, %p1997_p0 }
 0xbd5   : > { %p1525_p8 = por %p1524_p5, %p1523_p4 }
 0xbd6   : > { %p1521_p10 = pneg %p1520_p6 }
 0xbd7   : > { %p1527_p1 = por %p1526_p11, %p1525_p8 }
 0xbd9   : > { %p1528_p3 = pnand %p1527_p1, %p1521_p10 }
 0xbdb   : > { %1531 = shalt.err (!%p1528_p3)
}
 0xbdc   : > { %1326 = dma.vmem_to_hbm [thread:$0]  (%p1997_p0), %s1934_s19, 64, %s1932_s30, %s1072_s9  }
 0xbdd PF: > { %s1097_s23 = sand.u32 1, %s1562_s24   ;;  %p1998_p7 = scmp.ne.s32.totalorder %s1988_s8, 0 }
 0xbde   : > { %p1999_p9 = scmp.ge.s32.totalorder %s1574_s27, 2  ;;  %s1098_s29 = scalar_lea.sflag [#allocation4], %s1097_s23 }
 0xbe0   : > { %p1340_p12 = pnand %p1999_p9, %p1998_p7 }
 0xbe2   : > { %1557 = dma.done.wait (!%p1340_p12), %s1098_s29, 64  }
 0xbe3   : > { %1559 = vsyncadd (!%p1340_p12), %s1098_s29, 4294967232  ;;  %p21_p2 = scmp.ge.s32.totalorder %s1745_s13, 4   ;;  %s2000_s24 = smov %s1566_s25 }
 0xbe4   : > { %s2001_s25 = smov %s1570_s26  ;;  %s2002_s26 = smov %s1761_s17 }
 0xbe5   : > { %s2003_s27 = smov %s1745_s13  ;;  %23 = sbr.rel (!%p21_p2) target bundleno = 6 (0x6), region = 101 }
 0xbec   :  { %1103 = vsyncpa [#allocation3], 1 }
 0xbed   :  { %1105 = vsyncpa [#allocation3 + $0x1], 1 }
 0xbee   :  { %1106 = vsyncpa [#allocation6], 1 }
 0xbef   :  { %1107 = vsyncpa [#allocation4], 1 }
 0xbf0   :  { %1109 = vsyncpa [#allocation4 + $0x1], 1 }

</bundles_post_ra>
